<compile_context>
chip_gen: v6e
topology: v6e:2x2x1
jax: 0.10.0
libtpu: 0.0.40
codegen_flags: <defaults>
</compile_context>

<pallas_src>
import functools

import jax
import jax.numpy as jnp
from jax import lax
from jax.experimental import pallas as pl
from jax.experimental.pallas import tpu as pltpu


_GRAM_DTYPE = jnp.bfloat16          # MXU-native operands; accumulation stays f32.
_VMEM_BUDGET = 24 * 1024 * 1024     # conservative: leaves headroom on v7x (64 MiB)


def _round_up(x: int, m: int) -> int:
    return (x + m - 1) // m * m


def _vmem_need(ts: int, d_pad: int) -> int:
    # 2 operands x double-buffered bf16 (ts, d_pad) tiles + a handful of
    # (ts, ts) f32 temporaries (gram, l2, kmat, signed, ...).
    return 8 * ts * d_pad + 24 * ts * ts


def _pick_tile(n: int, d_pad: int) -> int:
    """Square tile edge (the symmetry schedule needs square blocks).

    Bigger tile => higher arithmetic intensity (FLOPs per streamed xj byte),
    capped by a conservative VMEM budget so the same table works on
    v5e (16 MiB default scoped), v6e (32 MiB) and v7x (64 MiB physical)."""
    if n <= 128:
        return 128                       # single lane-dense block (round to 128)
    for ts in (512, 256, 128):
        if n >= ts and _vmem_need(ts, d_pad) <= _VMEM_BUDGET:
            return ts
    return 128


def _make_mmd_kernel(ts: int, steps: int, kernel_num: int, use_squaring: bool):
    """Build the kernel body with static hyper-parameters closed over."""

    def kernel(bi_ref, bj_ref,                 # scalar-prefetch (SMEM, int32)
               wt_ref, scales_ref,             # SMEM f32 (pair weights, -2/bw)
               xi_ref, xj_ref,                 # (ts, d_pad) bf16 tiles
               sqi_ref, sqj_ref,               # 0.5*||x||^2, (ts,1)/(1,ts) f32
               ri_ref, cj_ref,                 # rank-1 sign vectors, (ts,1)/(1,ts)
               out_ref):                       # (1, 8, ts) f32, resident over s
        c = pl.program_id(0)
        s = pl.program_id(1)

        # (ts, ts) gram block on the MXU: bf16 operands, f32 accumulation.
        gram = lax.dot_general(
            xi_ref[...], xj_ref[...],
            dimension_numbers=(((1,), (1,)), ((), ())),
            preferred_element_type=jnp.float32,
        )

        # Half squared distance (the factor 2 is folded into the scales);
        # clamp against bf16 cancellation.
        half_l2 = jnp.maximum(sqi_ref[...] + sqj_ref[...] - gram, 0.0)

        if use_squaring:
            # kernel_mul == 2: only the widest kernel needs an EUP exp; the
            # narrower kernels are repeated squaring on the VPU.
            cur = jnp.exp(half_l2 * scales_ref[kernel_num - 1])
            kmat = cur
            for _ in range(kernel_num - 1):
                cur = cur * cur
                kmat = kmat + cur
        else:
            kmat = jnp.exp(half_l2 * scales_ref[0])
            for k in range(1, kernel_num):
                kmat = kmat + jnp.exp(half_l2 * scales_ref[k])

        # Rank-1 sign mask: sign(i,j) = r_i * r_j, r in {+1,-1,0} (0 = padding).
        signed = (kmat * cj_ref[...]) * ri_ref[...]

        # (ts, ts) -> (8, ts): sublane-group reduction with aligned slices
        # (pure VALU adds, no XLU cross-lane reduce).
        red = signed[0:8, :]
        for g in range(1, ts // 8):
            red = red + signed[g * 8:(g + 1) * 8, :]

        @pl.when(s == 0)
        def _init():
            out_ref[...] = jnp.zeros_like(out_ref)

        # 1.0 for diagonal block pairs, 2.0 off-diagonal (symmetry), 0.0 padding.
        wt = wt_ref[c * steps + s]
        out_ref[...] += (wt * red)[None, :, :]

    return kernel


@functools.partial(jax.jit, static_argnames=("kernel_mul", "kernel_num"))
def mmd_loss_pallas(source, target, kernel_mul=2.0, kernel_num=5):
    """Pallas TPU implementation of MMD_loss.forward(source, target)."""
    assert source.shape == target.shape and source.ndim == 2
    b, d = source.shape
    n = 2 * b

    total = jnp.concatenate(
        [source.astype(jnp.float32), target.astype(jnp.float32)], axis=0)  # (n, d)

    # ---- analytic bandwidth:  sum_ij ||x_i - x_j||^2 = 2 n sum_i ||x_i - mu||^2
    mu = jnp.mean(total, axis=0, keepdims=True)
    centered = total - mu                       # centering also protects the bf16 gram
    sum_l2 = 2.0 * n * jnp.sum(centered * centered)
    bandwidth = sum_l2 / float(n * n - n)
    bandwidth = bandwidth / (float(kernel_mul) ** (kernel_num // 2))
    bw = bandwidth * (float(kernel_mul) ** jnp.arange(kernel_num, dtype=jnp.float32))
    scales2 = (-2.0 / bw).astype(jnp.float32)   # factor 2 of the gram folded in

    # ---- tiling / padding (zero rows & zero features leave L2 unchanged) ----
    d_pad = _round_up(d, 128)
    ts = _pick_tile(n, d_pad)
    n_pad = _round_up(n, ts)

    x = jnp.pad(centered, ((0, n_pad - n), (0, d_pad - d)))     # f32
    x_mm = x.astype(_GRAM_DTYPE)                                # bf16 gram operands

    sq_half = 0.5 * jnp.sum(x * x, axis=1)                      # f32, 0 on padding
    sq_col = sq_half.reshape(n_pad, 1)
    sq_row = sq_half.reshape(1, n_pad)

    ridx = jnp.arange(n_pad)
    r = jnp.where(ridx < b, 1.0, jnp.where(ridx < n, -1.0, 0.0)).astype(jnp.float32)
    r_col = r.reshape(n_pad, 1)
    r_row = r.reshape(1, n_pad)

    # ---- triangular block-pair schedule (symmetry), split over 2 cores -------
    G = n_pad // ts
    pairs = [(bi, bj) for bi in range(G) for bj in range(bi + 1)]
    T = len(pairs)
    steps = (T + 1) // 2
    npairs = 2 * steps
    bi_l = [p[0] for p in pairs] + [0] * (npairs - T)
    bj_l = [p[1] for p in pairs] + [0] * (npairs - T)
    wt_l = [1.0 if p[0] == p[1] else 2.0 for p in pairs] + [0.0] * (npairs - T)
    bi_idx = jnp.asarray(bi_l, dtype=jnp.int32)
    bj_idx = jnp.asarray(bj_l, dtype=jnp.int32)
    wts = jnp.asarray(wt_l, dtype=jnp.float32)

    kernel = _make_mmd_kernel(ts, steps, int(kernel_num), float(kernel_mul) == 2.0)

    def xi_map(c, s, bi, bj):
        return (bi[c * steps + s], 0)

    def xj_map(c, s, bi, bj):
        return (bj[c * steps + s], 0)

    def sqj_map(c, s, bi, bj):
        return (0, bj[c * steps + s])

    def out_map(c, s, bi, bj):
        return (c, 0, 0)

    cp_kwargs = dict(dimension_semantics=("parallel", "arbitrary"))
    need = _vmem_need(ts, d_pad)
    if need > 12 * 1024 * 1024:
        # v5e default scoped VMEM is only 16 MiB; raise explicitly (still well
        # under v7x's 64 MiB physical VMEM).
        cp_kwargs["vmem_limit_bytes"] = int(
            min(max(2 * need, 32 * 1024 * 1024), 40 * 1024 * 1024))

    partials = pl.pallas_call(
        kernel,
        out_shape=jax.ShapeDtypeStruct((2, 8, ts), jnp.float32),
        grid_spec=pltpu.PrefetchScalarGridSpec(
            num_scalar_prefetch=2,                 # bi_idx, bj_idx drive index_maps
            grid=(2, steps),                       # (core split, triangle steps)
            in_specs=[
                pl.BlockSpec(memory_space=pltpu.MemorySpace.SMEM),   # pair weights
                pl.BlockSpec(memory_space=pltpu.MemorySpace.SMEM),   # scales (-2/bw)
                pl.BlockSpec((ts, d_pad), xi_map),                   # xi tile
                pl.BlockSpec((ts, d_pad), xj_map),                   # xj tile
                pl.BlockSpec((ts, 1), xi_map),                       # 0.5||xi||^2
                pl.BlockSpec((1, ts), sqj_map),                      # 0.5||xj||^2
                pl.BlockSpec((ts, 1), xi_map),                       # sign r (col)
                pl.BlockSpec((1, ts), sqj_map),                      # sign r (row)
            ],
            out_specs=pl.BlockSpec((1, 8, ts), out_map),
        ),
        compiler_params=pltpu.CompilerParams(**cp_kwargs),
    )(bi_idx, bj_idx, wts, scales2, x_mm, x_mm, sq_col, sq_row, r_col, r_row)

    return jnp.sum(partials) / float(b * b)


def mmd_loss_ref(source, target, kernel_mul=2.0, kernel_num=5):
    """Pure-JAX reference mirroring the PyTorch module (for verification)."""
    b = source.shape[0]
    total = jnp.concatenate([source, target], axis=0).astype(jnp.float32)
    n = total.shape[0]
    diff = total[:, None, :] - total[None, :, :]
    l2 = jnp.sum(diff * diff, axis=2)
    bandwidth = jnp.sum(l2) / (n * n - n)
    bandwidth = bandwidth / (kernel_mul ** (kernel_num // 2))
    kmat = sum(jnp.exp(-l2 / (bandwidth * kernel_mul ** i)) for i in range(kernel_num))
    xx = kmat[:b, :b]
    yy = kmat[b:, b:]
    xy = kmat[:b, b:]
    yx = kmat[b:, :b]
    return jnp.mean(xx + yy - xy - yx)


if __name__ == "__main__":
    key = jax.random.PRNGKey(0)
    k1, k2, k3, k4 = jax.random.split(key, 4)

    # Small case (single 128-padded block): batch=8 per domain, hidden=32.
    B, D = 8, 32
    src = jax.random.normal(k1, (B, D), dtype=jnp.float32)
    tgt = jax.random.normal(k2, (B, D), dtype=jnp.float32) + 0.5
    loss = jax.block_until_ready(mmd_loss_pallas(src, tgt))
    ref = jax.block_until_ready(mmd_loss_ref(src, tgt))
    assert jnp.isfinite(loss), "non-finite loss"
    assert abs(float(loss) - float(ref)) < 2e-2 * max(1.0, abs(float(ref))), (
        float(loss), float(ref))

    # Larger case: exercises the 2x2 block triangle (3 pairs), padding,
    # the rank-1 sign mask and the symmetry weights.
    B2, D2 = 144, 40   # n = 288 -> padded to 512, 256-wide square tiles
    src2 = jax.random.normal(k3, (B2, D2), dtype=jnp.float32)
    tgt2 = jax.random.normal(k4, (B2, D2), dtype=jnp.float32) + 0.25
    loss2 = jax.block_until_ready(mmd_loss_pallas(src2, tgt2))
    ref2 = jax.block_until_ready(mmd_loss_ref(src2, tgt2))
    assert jnp.isfinite(loss2), "non-finite loss (tiled)"
    assert abs(float(loss2) - float(ref2)) < 2e-2 * max(1.0, abs(float(ref2))), (
        float(loss2), float(ref2))

    # Translation-invariance / bf16-cancellation check: same data shifted by +10
    # (the in-wrapper centering makes the bf16 gram insensitive to the offset).
    src3 = src2 + 10.0
    tgt3 = tgt2 + 10.0
    loss3 = jax.block_until_ready(mmd_loss_pallas(src3, tgt3))
    ref3 = jax.block_until_ready(mmd_loss_ref(src3, tgt3))
    assert jnp.isfinite(loss3), "non-finite loss (offset)"
    assert abs(float(loss3) - float(ref3)) < 2e-2 * max(1.0, abs(float(ref3))), (
        float(loss3), float(ref3))

    print("KERNEL_OK")
</pallas_src>

<mosaic_0001>
module attributes {stable_mosaic.version = 11 : i64} {
  func.func @kernel(%arg0: i32, %arg1: i32, %arg2: memref<2xi32, #tpu.memory_space<smem>>, %arg3: memref<2xi32, #tpu.memory_space<smem>>, %arg4: memref<2xf32, #tpu.memory_space<smem>>, %arg5: memref<5xf32, #tpu.memory_space<smem>>, %arg6: memref<128x128xbf16, #tpu.memory_space<vmem>>, %arg7: memref<128x128xbf16, #tpu.memory_space<vmem>>, %arg8: memref<128x1xf32, #tpu.memory_space<vmem>>, %arg9: memref<1x128xf32, #tpu.memory_space<vmem>>, %arg10: memref<128x1xf32, #tpu.memory_space<vmem>>, %arg11: memref<1x128xf32, #tpu.memory_space<vmem>>, %arg12: memref<1x8x128xf32, #tpu.memory_space<vmem>>) attributes {dimension_semantics = [#tpu.dimension_semantics<parallel>, #tpu.dimension_semantics<arbitrary>], iteration_bounds = array<i64: 2, 1>, scalar_prefetch = 2 : i64, scratch_operands = 0 : i64, tpu.core_type = #tpu.core_type<tc>, window_params = [{transform_indices = @transform_0, window_bounds = array<i64: 2>}, {transform_indices = @transform_1, window_bounds = array<i64: 5>}, {transform_indices = @transform_2, window_bounds = array<i64: 128, 128>}, {transform_indices = @transform_3, window_bounds = array<i64: 128, 128>}, {transform_indices = @transform_4, window_bounds = array<i64: 128, 1>}, {transform_indices = @transform_5, window_bounds = array<i64: 1, 128>}, {transform_indices = @transform_6, window_bounds = array<i64: 128, 1>}, {transform_indices = @transform_7, window_bounds = array<i64: 1, 128>}, {transform_indices = @transform_8, window_bounds = array<i64: 1, 8, 128>}]} {
    %c0 = arith.constant 0 : index
    %c0_0 = arith.constant 0 : index
    %0 = vector.load %arg6[%c0, %c0_0] : memref<128x128xbf16, #tpu.memory_space<vmem>>, vector<128x128xbf16>
    %c0_1 = arith.constant 0 : index
    %c0_2 = arith.constant 0 : index
    %1 = vector.load %arg7[%c0_1, %c0_2] : memref<128x128xbf16, #tpu.memory_space<vmem>>, vector<128x128xbf16>
    %cst = arith.constant dense<0.000000e+00> : vector<128x128xf32>
    %2 = tpu.matmul %0, %1, %cst {dimension_numbers = #tpu.dot_dimension_numbers<[1], [1], [0], [0], [0, 0, 1, 0], [], []>} : vector<128x128xbf16>, vector<128x128xbf16>, vector<128x128xf32> -> vector<128x128xf32>
    %c0_3 = arith.constant 0 : index
    %c0_4 = arith.constant 0 : index
    %3 = vector.load %arg8[%c0_3, %c0_4] : memref<128x1xf32, #tpu.memory_space<vmem>>, vector<128x1xf32>
    %c0_5 = arith.constant 0 : index
    %c0_6 = arith.constant 0 : index
    %4 = vector.load %arg9[%c0_5, %c0_6] : memref<1x128xf32, #tpu.memory_space<vmem>>, vector<1x128xf32>
    %5 = vector.broadcast %3 : vector<128x1xf32> to vector<128x128xf32>
    %6 = vector.broadcast %4 : vector<1x128xf32> to vector<128x128xf32>
    %7 = arith.addf %5, %6 : vector<128x128xf32>
    %8 = arith.subf %7, %2 : vector<128x128xf32>
    %cst_7 = arith.constant 0.000000e+00 : f32
    %9 = vector.broadcast %cst_7 : f32 to vector<128x128xf32>
    %10 = arith.maximumf %8, %9 : vector<128x128xf32>
    %c4 = arith.constant 4 : index
    %11 = memref.load %arg5[%c4] : memref<5xf32, #tpu.memory_space<smem>>
    %12 = vector.broadcast %11 : f32 to vector<128x128xf32>
    %13 = arith.mulf %10, %12 : vector<128x128xf32>
    %14 = math.exp %13 : vector<128x128xf32>
    %15 = arith.mulf %14, %14 : vector<128x128xf32>
    %16 = arith.addf %14, %15 : vector<128x128xf32>
    %17 = arith.mulf %15, %15 : vector<128x128xf32>
    %18 = arith.addf %16, %17 : vector<128x128xf32>
    %19 = arith.mulf %17, %17 : vector<128x128xf32>
    %20 = arith.addf %18, %19 : vector<128x128xf32>
    %21 = arith.mulf %19, %19 : vector<128x128xf32>
    %22 = arith.addf %20, %21 : vector<128x128xf32>
    %c0_8 = arith.constant 0 : index
    %c0_9 = arith.constant 0 : index
    %23 = vector.load %arg11[%c0_8, %c0_9] : memref<1x128xf32, #tpu.memory_space<vmem>>, vector<1x128xf32>
    %24 = vector.broadcast %23 : vector<1x128xf32> to vector<128x128xf32>
    %25 = arith.mulf %22, %24 : vector<128x128xf32>
    %c0_10 = arith.constant 0 : index
    %c0_11 = arith.constant 0 : index
    %26 = vector.load %arg10[%c0_10, %c0_11] : memref<128x1xf32, #tpu.memory_space<vmem>>, vector<128x1xf32>
    %27 = vector.broadcast %26 : vector<128x1xf32> to vector<128x128xf32>
    %28 = arith.mulf %25, %27 : vector<128x128xf32>
    %29 = vector.extract_strided_slice %28 {offsets = [0, 0], sizes = [8, 128], strides = [1, 1]} : vector<128x128xf32> to vector<8x128xf32>
    %30 = vector.extract_strided_slice %28 {offsets = [8, 0], sizes = [8, 128], strides = [1, 1]} : vector<128x128xf32> to vector<8x128xf32>
    %31 = arith.addf %29, %30 : vector<8x128xf32>
    %32 = vector.extract_strided_slice %28 {offsets = [16, 0], sizes = [8, 128], strides = [1, 1]} : vector<128x128xf32> to vector<8x128xf32>
    %33 = arith.addf %31, %32 : vector<8x128xf32>
    %34 = vector.extract_strided_slice %28 {offsets = [24, 0], sizes = [8, 128], strides = [1, 1]} : vector<128x128xf32> to vector<8x128xf32>
    %35 = arith.addf %33, %34 : vector<8x128xf32>
    %36 = vector.extract_strided_slice %28 {offsets = [32, 0], sizes = [8, 128], strides = [1, 1]} : vector<128x128xf32> to vector<8x128xf32>
    %37 = arith.addf %35, %36 : vector<8x128xf32>
    %38 = vector.extract_strided_slice %28 {offsets = [40, 0], sizes = [8, 128], strides = [1, 1]} : vector<128x128xf32> to vector<8x128xf32>
    %39 = arith.addf %37, %38 : vector<8x128xf32>
    %40 = vector.extract_strided_slice %28 {offsets = [48, 0], sizes = [8, 128], strides = [1, 1]} : vector<128x128xf32> to vector<8x128xf32>
    %41 = arith.addf %39, %40 : vector<8x128xf32>
    %42 = vector.extract_strided_slice %28 {offsets = [56, 0], sizes = [8, 128], strides = [1, 1]} : vector<128x128xf32> to vector<8x128xf32>
    %43 = arith.addf %41, %42 : vector<8x128xf32>
    %44 = vector.extract_strided_slice %28 {offsets = [64, 0], sizes = [8, 128], strides = [1, 1]} : vector<128x128xf32> to vector<8x128xf32>
    %45 = arith.addf %43, %44 : vector<8x128xf32>
    %46 = vector.extract_strided_slice %28 {offsets = [72, 0], sizes = [8, 128], strides = [1, 1]} : vector<128x128xf32> to vector<8x128xf32>
    %47 = arith.addf %45, %46 : vector<8x128xf32>
    %48 = vector.extract_strided_slice %28 {offsets = [80, 0], sizes = [8, 128], strides = [1, 1]} : vector<128x128xf32> to vector<8x128xf32>
    %49 = arith.addf %47, %48 : vector<8x128xf32>
    %50 = vector.extract_strided_slice %28 {offsets = [88, 0], sizes = [8, 128], strides = [1, 1]} : vector<128x128xf32> to vector<8x128xf32>
    %51 = arith.addf %49, %50 : vector<8x128xf32>
    %52 = vector.extract_strided_slice %28 {offsets = [96, 0], sizes = [8, 128], strides = [1, 1]} : vector<128x128xf32> to vector<8x128xf32>
    %53 = arith.addf %51, %52 : vector<8x128xf32>
    %54 = vector.extract_strided_slice %28 {offsets = [104, 0], sizes = [8, 128], strides = [1, 1]} : vector<128x128xf32> to vector<8x128xf32>
    %55 = arith.addf %53, %54 : vector<8x128xf32>
    %56 = vector.extract_strided_slice %28 {offsets = [112, 0], sizes = [8, 128], strides = [1, 1]} : vector<128x128xf32> to vector<8x128xf32>
    %57 = arith.addf %55, %56 : vector<8x128xf32>
    %58 = vector.extract_strided_slice %28 {offsets = [120, 0], sizes = [8, 128], strides = [1, 1]} : vector<128x128xf32> to vector<8x128xf32>
    %59 = arith.addf %57, %58 : vector<8x128xf32>
    %c0_i32 = arith.constant 0 : i32
    %60 = arith.cmpi eq, %arg1, %c0_i32 : i32
    %61 = arith.extui %60 : i1 to i32
    %c0_i32_12 = arith.constant 0 : i32
    %62 = arith.cmpi ne, %61, %c0_i32_12 : i32
    scf.if %62 {
      %cst_19 = arith.constant 0.000000e+00 : f32
      %73 = vector.broadcast %cst_19 : f32 to vector<1x8x128xf32>
      %c0_20 = arith.constant 0 : index
      %c0_21 = arith.constant 0 : index
      %c0_22 = arith.constant 0 : index
      %74 = vector.load %arg12[%c0_20, %c0_21, %c0_22] : memref<1x8x128xf32, #tpu.memory_space<vmem>>, vector<1x8x128xf32>
      tpu.vector_store %arg12[%c0_20, %c0_21, %c0_22], %73 {strides = array<i32>} : memref<1x8x128xf32, #tpu.memory_space<vmem>>, vector<1x8x128xf32>,
    } else {
    }
    %c1_i32 = arith.constant 1 : i32
    %63 = arith.muli %arg0, %c1_i32 : i32
    %64 = arith.addi %63, %arg1 : i32
    %65 = arith.index_cast %64 : i32 to index
    %66 = memref.load %arg4[%65] : memref<2xf32, #tpu.memory_space<smem>>
    %c0_13 = arith.constant 0 : index
    %c0_14 = arith.constant 0 : index
    %c0_15 = arith.constant 0 : index
    %67 = vector.load %arg12[%c0_13, %c0_14, %c0_15] : memref<1x8x128xf32, #tpu.memory_space<vmem>>, vector<1x8x128xf32>
    %68 = vector.broadcast %66 : f32 to vector<8x128xf32>
    %69 = arith.mulf %68, %59 : vector<8x128xf32>
    %70 = vector.shape_cast %69 : vector<8x128xf32> to vector<1x8x128xf32>
    %71 = arith.addf %67, %70 : vector<1x8x128xf32>
    %c0_16 = arith.constant 0 : index
    %c0_17 = arith.constant 0 : index
    %c0_18 = arith.constant 0 : index
    %72 = vector.load %arg12[%c0_16, %c0_17, %c0_18] : memref<1x8x128xf32, #tpu.memory_space<vmem>>, vector<1x8x128xf32>
    tpu.vector_store %arg12[%c0_16, %c0_17, %c0_18], %71 {strides = array<i32>} : memref<1x8x128xf32, #tpu.memory_space<vmem>>, vector<1x8x128xf32>,
    return
  }
  func.func @transform_0(%arg0: i32, %arg1: i32, %arg2: memref<2xi32, #tpu.memory_space<smem>>, %arg3: memref<2xi32, #tpu.memory_space<smem>>) -> i32 {
    %c0_i32 = arith.constant 0 : i32
    %c0_i32_0 = arith.constant 0 : i32
    return %c0_i32 : i32
  }
  func.func @transform_1(%arg0: i32, %arg1: i32, %arg2: memref<2xi32, #tpu.memory_space<smem>>, %arg3: memref<2xi32, #tpu.memory_space<smem>>) -> i32 {
    %c0_i32 = arith.constant 0 : i32
    %c0_i32_0 = arith.constant 0 : i32
    return %c0_i32 : i32
  }
  func.func @transform_2(%arg0: i32, %arg1: i32, %arg2: memref<2xi32, #tpu.memory_space<smem>>, %arg3: memref<2xi32, #tpu.memory_space<smem>>) -> (i32, i32) {
    %c1_i32 = arith.constant 1 : i32
    %0 = arith.muli %arg0, %c1_i32 : i32
    %1 = arith.addi %0, %arg1 : i32
    %2 = arith.index_cast %1 : i32 to index
    %3 = memref.load %arg2[%2] : memref<2xi32, #tpu.memory_space<smem>>
    %c0_i32 = arith.constant 0 : i32
    %c0_i32_0 = arith.constant 0 : i32
    return %3, %c0_i32 : i32, i32
  }
  func.func @transform_3(%arg0: i32, %arg1: i32, %arg2: memref<2xi32, #tpu.memory_space<smem>>, %arg3: memref<2xi32, #tpu.memory_space<smem>>) -> (i32, i32) {
    %c1_i32 = arith.constant 1 : i32
    %0 = arith.muli %arg0, %c1_i32 : i32
    %1 = arith.addi %0, %arg1 : i32
    %2 = arith.index_cast %1 : i32 to index
    %3 = memref.load %arg3[%2] : memref<2xi32, #tpu.memory_space<smem>>
    %c0_i32 = arith.constant 0 : i32
    %c0_i32_0 = arith.constant 0 : i32
    return %3, %c0_i32 : i32, i32
  }
  func.func @transform_4(%arg0: i32, %arg1: i32, %arg2: memref<2xi32, #tpu.memory_space<smem>>, %arg3: memref<2xi32, #tpu.memory_space<smem>>) -> (i32, i32) {
    %c1_i32 = arith.constant 1 : i32
    %0 = arith.muli %arg0, %c1_i32 : i32
    %1 = arith.addi %0, %arg1 : i32
    %2 = arith.index_cast %1 : i32 to index
    %3 = memref.load %arg2[%2] : memref<2xi32, #tpu.memory_space<smem>>
    %c0_i32 = arith.constant 0 : i32
    %c0_i32_0 = arith.constant 0 : i32
    return %3, %c0_i32 : i32, i32
  }
  func.func @transform_5(%arg0: i32, %arg1: i32, %arg2: memref<2xi32, #tpu.memory_space<smem>>, %arg3: memref<2xi32, #tpu.memory_space<smem>>) -> (i32, i32) {
    %c1_i32 = arith.constant 1 : i32
    %0 = arith.muli %arg0, %c1_i32 : i32
    %1 = arith.addi %0, %arg1 : i32
    %2 = arith.index_cast %1 : i32 to index
    %3 = memref.load %arg3[%2] : memref<2xi32, #tpu.memory_space<smem>>
    %c0_i32 = arith.constant 0 : i32
    %c0_i32_0 = arith.constant 0 : i32
    return %c0_i32, %3 : i32, i32
  }
  func.func @transform_6(%arg0: i32, %arg1: i32, %arg2: memref<2xi32, #tpu.memory_space<smem>>, %arg3: memref<2xi32, #tpu.memory_space<smem>>) -> (i32, i32) {
    %c1_i32 = arith.constant 1 : i32
    %0 = arith.muli %arg0, %c1_i32 : i32
    %1 = arith.addi %0, %arg1 : i32
    %2 = arith.index_cast %1 : i32 to index
    %3 = memref.load %arg2[%2] : memref<2xi32, #tpu.memory_space<smem>>
    %c0_i32 = arith.constant 0 : i32
    %c0_i32_0 = arith.constant 0 : i32
    return %3, %c0_i32 : i32, i32
  }
  func.func @transform_7(%arg0: i32, %arg1: i32, %arg2: memref<2xi32, #tpu.memory_space<smem>>, %arg3: memref<2xi32, #tpu.memory_space<smem>>) -> (i32, i32) {
    %c1_i32 = arith.constant 1 : i32
    %0 = arith.muli %arg0, %c1_i32 : i32
    %1 = arith.addi %0, %arg1 : i32
    %2 = arith.index_cast %1 : i32 to index
    %3 = memref.load %arg3[%2] : memref<2xi32, #tpu.memory_space<smem>>
    %c0_i32 = arith.constant 0 : i32
    %c0_i32_0 = arith.constant 0 : i32
    return %c0_i32, %3 : i32, i32
  }
  func.func @transform_8(%arg0: i32, %arg1: i32, %arg2: memref<2xi32, #tpu.memory_space<smem>>, %arg3: memref<2xi32, #tpu.memory_space<smem>>) -> (i32, i32, i32) {
    %c0_i32 = arith.constant 0 : i32
    %c0_i32_0 = arith.constant 0 : i32
    %c0_i32_1 = arith.constant 0 : i32
    return %arg0, %c0_i32, %c0_i32_0 : i32, i32, i32
  }
}

</mosaic_0001>

<bundles_post_ra>
// kernel: mmd_loss_pallas.1
= control target key start
LH: loop header
LB: loop body
LE: loop exit
PB: predicated region body
PF: predicated region fallthrough
CT: control target
= control target key end

     0   :  { %s1974_s0 = inlined_call_operand.vmem [shape: s32[2], index: 0, kind: input, shape index: {}, may-alias: {0,1}]   ;;  %s1975_s2 = inlined_call_operand.vmem [shape: f32[2], index: 2, kind: input, shape index: {}]   ;;  %s1976_s3 = inlined_call_operand.vmem [shape: f32[5], index: 3, kind: input, shape index: {}]   ;;  %s1977_s4 = inlined_call_operand.vmem [shape: bf16[128,128], index: 4, kind: input, shape index: {}, may-alias: {4,5}]   ;;  %s1978_s5 = inlined_call_operand.vmem [shape: bf16[128,128], index: 5, kind: input, shape index: {}, may-alias: {4,5}]   ;;  %s1979_s6 = inlined_call_operand.vmem [shape: f32[128,1], index: 6, kind: input, shape index: {}]   ;;  %s1980_s7 = inlined_call_operand.vmem [shape: f32[1,128], index: 7, kind: input, shape index: {}]   ;;  %s1981_s8 = inlined_call_operand.vmem [shape: f32[128,1], index: 8, kind: input, shape index: {}]   ;;  %s1982_s9 = inlined_call_operand.vmem [shape: f32[1,128], index: 9, kind: input, shape index: {}]   ;;  %s1983_s10 = inlined_call_operand.vmem [shape: f32[2,8,128], index: 10, kind: output, shape index: {}]   ;;  %s1984_s1 = inlined_call_operand.vmem [shape: s32[2], index: 1, kind: input, shape index: {}, may-alias: {0,1}]  }
   0x1   :  { %s15_s15 = sshll.u32 %s1974_s0, 4  ;;  %s19_s18 = sshll.u32 %s1984_s1, 4  ;;  %s16_s15 = int_to_ptr.vmem [resolvable:$true] %s15_s15  ;;  %s20_s18 = int_to_ptr.vmem [resolvable:$true] %s19_s18 }
   0x2   :  { %s1592_s19 = scalar_lea.vmem %s16_s15, 16  ;;  %p1597_p1 = scmp.lt.s32.totalorder %s16_s15, %s16_s15 }
   0x3   :  { %p1593_p0 = scmp.ne.s32.totalorder %s16_s15, %s1592_s19  ;;  %p1598_p2 = scmp.lt.s32.totalorder %s1592_s19, %s1592_s19 }
   0x5   :  { %p1599_p3 = por %p1598_p2, %p1597_p1 }
   0x7   :  { %p1600_p4 = pnand %p1599_p3, %p1593_p0 }
   0x9   :  { %1603 = shalt.err (!%p1600_p4)  }
   0xa   :  { %s1680_s20 = smov [#allocation3]   ;;  %s1604_s21 = scalar_lea.vmem %s20_s18, 16 }
   0xb   :  { %18 = dma.vmem_to_smem %s16_s15, 16, %s1680_s20, [#allocation2] }
   0xc   :  { %p1605_p5 = scmp.ne.s32.totalorder %s20_s18, %s1604_s21  ;;  %p1609_p6 = scmp.lt.s32.totalorder %s20_s18, %s20_s18 }
   0xd   :  { %p1610_p7 = scmp.lt.s32.totalorder %s1604_s21, %s1604_s21 }
   0xf   :  { %p1611_p8 = por %p1610_p7, %p1609_p6 }
  0x11   :  { %p1612_p9 = pnand %p1611_p8, %p1605_p5 }
  0x13   :  { %1615 = shalt.err (!%p1612_p9)  }
  0x14   :  { %s1681_s0 = smov [#allocation4]  }
  0x15   :  { %22 = dma.vmem_to_smem %s20_s18, 16, %s1681_s0, [#allocation2] }
  0x16   :  { %1658 = dma.done.wait [#allocation2], 32 }
  0x17   :  { %1659 = vsyncadd [#allocation2], 4294967264 }
  0x18   :  { %24 = sfence }
  0x19   :  { %25 = vsyncpa [#allocation6], 0 }
  0x1a   :  { %26 = vsyncpa [#allocation8], 0  ;;  %s1746_s1 = smov 0   ;;  %s1748_s22 = smov 0  }
  0x1b   :  { %s1750_s23 = smov 0  }
  0x1c LB: > { %s1390_s24 = sadd.s32 4294967295, %s1678_s23   ;;  %s44_s25 = sadd.s32 1, %s1674_s22  ;;  %s1678_s23 = sphi %s1750_s23, %s32_s23   ;;  %s1674_s22 = sphi %s1748_s22, %s1994_s22   ;;  %s1670_s1 = sphi %s1746_s1, %s1993_s1  }
  0x1d   : > { %p46_p10 = scmp.ge.s32.totalorder %s44_s25, 2  ;;  %p1392_p11 = scmp.ge.s32.totalorder %s1678_s23, 1 }
  0x1e   : > { %p297_p12 = scmp.lt.s32.totalorder %s1678_s23, 3  ;;  %p1771_p0 = scmp.eq.s32.totalorder %s1390_s24, 0 }
  0x1f   : > { %s1996_s25 = smov (%p46_p10, %s44_s25), 0  ;;  %s310_s30 = sshll.u32 %s1975_s2, 4  ;;  %s311_s30 = int_to_ptr.vmem [resolvable:$true] %s310_s30 }
  0x20   : > { %p1767_p13 = pnand %p1392_p11, %p297_p12  ;;  %s321_s13 = sshll.u32 %s1976_s3, 4  ;;  %s322_s13 = int_to_ptr.vmem [resolvable:$true] %s321_s13 }
  0x21   : > { %s1989_s27 = scalar_select %p1771_p0, 1, 0 }
  0x22   : > { %s1988_s26 = scalar_select %p1767_p13, 1, 0 }
  0x23   : > { %p1501_p1 = pneg %p1767_p13  ;;  %s1616_s15 = scalar_lea.vmem %s311_s30, 16 }
  0x24   : > { %p1617_p3 = scmp.ne.s32.totalorder %s311_s30, %s1616_s15  ;;  %p1624_p7 = scmp.lt.s32.totalorder %s311_s30, %s311_s30 }
  0x25   : > { %p1785_p2 = pnand %p1771_p0, %p1501_p1  ;;  %p1625_p8 = scmp.lt.s32.totalorder %s1616_s15, %s1616_s15 }
  0x27   : > { %p1618_p4 = pneg %p1785_p2  ;;  %p1626_p9 = por %p1625_p8, %p1624_p7 }
  0x29   : > { %p1619_p5 = pnand %p1618_p4, %p1617_p3 }
  0x2b   : > { %p1620_p6 = pneg %p1619_p5 }
  0x2d   : > { %p1627_p10 = pnand %p1626_p9, %p1620_p6 }
  0x2f   : > { %1630 = shalt.err (!%p1627_p10)
}
  0x30   : > { %s1682_s16 = smov [#allocation5]   ;;  %s1631_s17 = scalar_lea.vmem %s322_s13, 16 }
  0x31   : > { %1504 = dma.vmem_to_smem (!%p1785_p2), %s311_s30, 16, %s1682_s16, [#allocation6]  }
  0x32   : > { %p1632_p11 = scmp.ne.s32.totalorder %s322_s13, %s1631_s17  ;;  %p1639_p0 = scmp.lt.s32.totalorder %s322_s13, %s322_s13 }
  0x33   : > { %p1640_p13 = scmp.lt.s32.totalorder %s1631_s17, %s1631_s17 }
  0x34   : > { %p1634_p12 = pnand %p1632_p11, %p1618_p4 }
  0x35   : > { %p1641_p3 = por %p1640_p13, %p1639_p0 }
  0x36   : > { %p1635_p1 = pneg %p1634_p12 }
  0x38   : > { %p1642_p5 = pnand %p1641_p3, %p1635_p1 }
  0x3a   : > { %1645 = shalt.err (!%p1642_p5)
}
  0x3b   : > { %s1683_s18 = smov [#allocation7]   ;;  %p1991_p6 = scmp.ne.s32.totalorder %s1988_s26, 0 }
  0x3c   : > { %1507 = dma.vmem_to_smem (!%p1785_p2), %s322_s13, 16, %s1683_s18, [#allocation8]  }
  0x3d   : > { %406 = sbr.rel (%p1991_p6) target bundleno = 426 (0x1aa), region = 52  ;;  %p1992_p7 = scmp.ne.s32.totalorder (!%p1991_p6), %s1989_s27, 0 }
  0x42   : > { %1661 = dma.done.wait (%p1992_p7), [#allocation6], 16  }
  0x43   : > { %1663 = vsyncadd (%p1992_p7), [#allocation6], 4294967280 }
  0x44   : > { %1665 = dma.done.wait (%p1992_p7), [#allocation8], 16  }
  0x45   : > { %1667 = vsyncadd (%p1992_p7), [#allocation8], 4294967280 }
  0x46   : > { %416 = sfence }
  0x47   : > { %s488_s19 = sld [smem:[#allocation4 + %s1670_s1]]  ;;  %v1684_v0 = vmov 0   ;;  %p531_p10 = scmp.lt.s32.totalorder %s1670_s1, 1 }
  0x48   : > { %s478_s20 = sld [smem:[#allocation3 + %s1670_s1]]  ;;  %1542 = vset.pattern.permute.xlu0 %v1684_v0  ;;  %1543 = vset.pattern.permute.xlu1 %v1684_v0 }
  0x49   : > { %s498_s21 = sld [smem:[#allocation3 + %s1670_s1]] }
  0x4a   : > { %s508_s28 = sld [smem:[#allocation4 + %s1670_s1]] }
  0x4b   : > { %s1913_s12 = sld [smem:[#allocation4 + %s1670_s1]] }
  0x4c   : > { %s1246_s16 = sld [smem:[#allocation5 + %s1670_s1]] }
  0x4d   : > { %s1401_s0 = sshll.u32 %s488_s19, 4  ;;  %s515_s19 = sld [smem:[#allocation3 + %s1670_s1]] }
  0x4e   : > { %p490_p13 = scmp.lt.s32.totalorder %s1401_s0, 15  ;;  %s1399_s24 = sshll.u32 %s478_s20, 4 }
  0x4f   : > { %p480_p0 = scmp.lt.s32.totalorder %s1399_s24, 15  ;;  %s1403_s30 = sshll.u32 %s498_s21, 4 }
  0x50   : > { %s1998_s0 = smov (!%p490_p13, %s1401_s0), 15  ;;  %p500_p2 = scmp.lt.s32.totalorder %s1403_s30, 15 }
  0x51   : > { %s2000_s24 = smov (!%p480_p0, %s1399_s24), 15  ;;  %s1402_s26 = sshll.u32 %s1998_s0, 2 }
  0x52   : > { %s1811_s29 = scalar_lea.vmem %s1978_s5, %s1402_s26  ;;  %s1400_s11 = sshll.u32 %s2000_s24, 2 }
  0x53   : > { %v1544_v1 = vld [vmem:[%s1811_s29 + $0x38] sm:$0xff]   ;;  %v1545_v2 = vld [vmem:[%s1811_s29 + $0x30] sm:$0xff]   ;;  %s1818_s14 = scalar_lea.vmem %s1977_s4, %s1400_s11  ;;  %s2002_s30 = smov (!%p500_p2, %s1403_s30), 15  ;;  %v1546_v3 = vld [vmem:[%s1811_s29 + $0x28] sm:$0xff]  }
  0x54   : > { %1445 = vmatprep.subr.bf16.mxu0 %v1544_v1  ;;  %1477 = vmatprep.subr.bf16.mxu1 %v1544_v1  ;;  %v1552_v4 = vld [vmem:[%s1818_s14] sm:$0xff]   ;;  %s1404_s15 = sshll.u32 %s2002_s30, 3  ;;  %v1548_v13 = vld [vmem:[%s1811_s29 + $0x18] sm:$0xff]   ;;  %s1405_s20 = sshll.u32 %s515_s19, 4  ;;  %v1549_v18 = vld [vmem:[%s1811_s29 + $0x10] sm:$0xff]  }
  0x55   : > { %1446 = vmatpush3.bf16.xpose.msra.mxu0 %v1544_v1  ;;  %1485 = vmatpush3.bf16.xpose.msra.mxu1 %v1544_v1  ;;  %v1553_v5 = vld [vmem:[%s1818_s14 + $0x20] sm:$0xff]   ;;  %s1826_s18 = scalar_lea.vmem %s1979_s6, %s1404_s15  ;;  %p517_p4 = scmp.lt.s32.totalorder %s1405_s20, 15  ;;  %v1550_v23 = vld [vmem:[%s1811_s29 + $0x8] sm:$0xff]   ;;  %v1556_v39 = vld [vmem:[%s1818_s14 + $0x10] sm:$0xff]  }
  0x56   : > { %1447 = vmatprep.subr.bf16.mxu0 %v1545_v2  ;;  %1478 = vmatprep.subr.bf16.mxu1 %v1545_v2  ;;  %v1547_v6 = vld [vmem:[%s1811_s29 + $0x20] sm:$0xff]   ;;  %v763_v8 = vld [vmem:[%s1826_s18 + $0x10] sm:$0xff]  ;;  %v762_v9 = vld [vmem:[%s1826_s18 + $0x8] sm:$0xff]  ;;  %p509_p8 = scmp.lt.s32.totalorder %s508_s28, 0  ;;  %s1425_s11 = sld [smem:[#allocation7 + $0x4]] }
  0x57   : > { %1461 = vmatprep.mubr.bf16.mxu0 %v1552_v4  ;;  %1469 = vmatprep.mubr.bf16.mxu1 %v1553_v5  ;;  %v761_v7 = vld [vmem:[%s1826_s18] sm:$0xff]  ;;  %v764_v10 = vld [vmem:[%s1826_s18 + $0x18] sm:$0xff]  ;;  %v766_v12 = vld [vmem:[%s1826_s18 + $0x28] sm:$0xff]  ;;  %s2004_s20 = smov (!%p517_p4, %s1405_s20), 15  ;;  %p526_p9 = scmp.lt.s32.totalorder %s1913_s12, 0 }
  0x58   : > { %780 = vperm.xlu0 %1542, %v761_v7   ;;  %790 = vperm.xlu1 %1543, %v763_v8   ;;  %v765_v11 = vld [vmem:[%s1826_s18 + $0x20] sm:$0xff]  ;;  %v767_v14 = vld [vmem:[%s1826_s18 + $0x30] sm:$0xff]  ;;  %v768_v15 = vld [vmem:[%s1826_s18 + $0x38] sm:$0xff]  ;;  %s1406_s21 = sshll.u32 %s2004_s20, 3  ;;  %s2006_s28 = smov (!%p509_p8, %s508_s28), 0 }
  0x59   : > { %v769_v16 = vld [vmem:[%s1826_s18 + $0x40] sm:$0xff]  ;;  %v770_v17 = vld [vmem:[%s1826_s18 + $0x48] sm:$0xff]  ;;  %v771_v19 = vld [vmem:[%s1826_s18 + $0x50] sm:$0xff]  ;;  %s1852_s26 = scalar_lea.vmem %s1981_s8, %s1406_s21  ;;  %s511_s30 = scalar_lea.vmem %s1980_s7, %s2006_s28 }
  0x5a   : > { %v772_v20 = vld [vmem:[%s1826_s18 + $0x58] sm:$0xff]  ;;  %v773_v21 = vld [vmem:[%s1826_s18 + $0x60] sm:$0xff]  ;;  %v774_v22 = vld [vmem:[%s1826_s18 + $0x68] sm:$0xff]  ;;  %s2008_s12 = smov (!%p526_p9, %s1913_s12), 0  ;;  %s2010_s1 = smov (!%p531_p10, %s1670_s1), 1 }
  0x5b   : > { %v775_v24 = vld [vmem:[%s1826_s18 + $0x70] sm:$0xff]  ;;  %v776_v25 = vld [vmem:[%s1826_s18 + $0x78] sm:$0xff]  ;;  %v1113_v26 = vld [vmem:[%s1852_s26] sm:$0xff]  ;;  %s528_s15 = scalar_lea.vmem %s1982_s9, %s2008_s12  ;;  %s1407_s17 = sshll.u32 %s2010_s1, 3 }
  0x5c   : > { %785 = vperm.xlu0 %1542, %v762_v9   ;;  %795 = vperm.xlu1 %1543, %v764_v10   ;;  %v1114_v27 = vld [vmem:[%s1852_s26 + $0x8] sm:$0xff]  ;;  %v1551_v28 = vld [vmem:[%s1811_s29] sm:$0xff]   ;;  %v1115_v29 = vld [vmem:[%s1852_s26 + $0x10] sm:$0xff]  ;;  %v1889_v5 = vstv %s1425_s11  ;;  %s534_s20 = scalar_lea.vmem %s1983_s10, %s1407_s17 }
  0x5d   : > { %1448 = vmatpush3.bf16.xpose.msra.mxu0 %v1545_v2  ;;  %1486 = vmatpush3.bf16.xpose.msra.mxu1 %v1545_v2  ;;  %v1116_v30 = vld [vmem:[%s1852_s26 + $0x18] sm:$0xff]  ;;  %v1117_v31 = vld [vmem:[%s1852_s26 + $0x20] sm:$0xff]  ;;  %v1118_v32 = vld [vmem:[%s1852_s26 + $0x28] sm:$0xff] }
  0x5e   : > { %1449 = vmatprep.subr.bf16.mxu0 %v1546_v3  ;;  %1479 = vmatprep.subr.bf16.mxu1 %v1546_v3  ;;  %v1119_v33 = vld [vmem:[%s1852_s26 + $0x30] sm:$0xff]  ;;  %v1120_v34 = vld [vmem:[%s1852_s26 + $0x38] sm:$0xff]  ;;  %v1554_v35 = vld [vmem:[%s1818_s14 + $0x8] sm:$0xff]  }
  0x5f   : > { %v1555_v36 = vld [vmem:[%s1818_s14 + $0x28] sm:$0xff]   ;;  %v1121_v37 = vld [vmem:[%s1852_s26 + $0x40] sm:$0xff]  ;;  %v1557_v40 = vld [vmem:[%s1818_s14 + $0x30] sm:$0xff]  }
  0x60   : > { %800 = vperm.xlu0 %1542, %v765_v11   ;;  %805 = vperm.xlu1 %1543, %v766_v12   ;;  %v1122_v38 = vld [vmem:[%s1852_s26 + $0x48] sm:$0xff]  ;;  %v1123_v41 = vld [vmem:[%s1852_s26 + $0x50] sm:$0xff]  ;;  %v1124_v42 = vld [vmem:[%s1852_s26 + $0x58] sm:$0xff] }
  0x61   : > { %v1558_v43 = vld [vmem:[%s1818_s14 + $0x18] sm:$0xff]   ;;  %v1125_v45 = vld [vmem:[%s1852_s26 + $0x60] sm:$0xff]  ;;  %v1126_v46 = vld [vmem:[%s1852_s26 + $0x68] sm:$0xff] }
  0x62   : > { %v1559_v44 = vld [vmem:[%s1818_s14 + $0x38] sm:$0xff]   ;;  %v1127_v47 = vld [vmem:[%s1852_s26 + $0x70] sm:$0xff]  ;;  %v1881_v55 = vld [vmem:[%s511_s30] ss:$0 sm:$0xff] }
  0x63   : > { %v1128_v48 = vld [vmem:[%s1852_s26 + $0x78] sm:$0xff] }
  0x64   : > { %810 = vperm.xlu0 %1542, %v767_v14   ;;  %815 = vperm.xlu1 %1543, %v768_v15  }
  0x65   : > { %1450 = vmatpush3.bf16.xpose.msra.mxu0 %v1546_v3  ;;  %1487 = vmatpush3.bf16.xpose.msra.mxu1 %v1546_v3 }
  0x66   : > { %1451 = vmatprep.subr.bf16.mxu0 %v1547_v6  ;;  %1480 = vmatprep.subr.bf16.mxu1 %v1547_v6 }
  0x68   : > { %820 = vperm.xlu0 %1542, %v769_v16   ;;  %825 = vperm.xlu1 %1543, %v770_v17  }
  0x6c   : > { %830 = vperm.xlu0 %1542, %v771_v19   ;;  %835 = vperm.xlu1 %1543, %v772_v20  }
  0x6d   : > { %1452 = vmatpush3.bf16.xpose.msra.mxu0 %v1547_v6  ;;  %1488 = vmatpush3.bf16.xpose.msra.mxu1 %v1547_v6 }
  0x6e   : > { %1453 = vmatprep.subr.bf16.mxu0 %v1548_v13  ;;  %1481 = vmatprep.subr.bf16.mxu1 %v1548_v13 }
  0x70   : > { %840 = vperm.xlu0 %1542, %v773_v21   ;;  %845 = vperm.xlu1 %1543, %v774_v22  }
  0x74   : > { %850 = vperm.xlu0 %1542, %v775_v24   ;;  %855 = vperm.xlu1 %1543, %v776_v25  }
  0x75   : > { %1454 = vmatpush3.bf16.xpose.msra.mxu0 %v1548_v13  ;;  %1489 = vmatpush3.bf16.xpose.msra.mxu1 %v1548_v13 }
  0x76   : > { %1455 = vmatprep.subr.bf16.mxu0 %v1549_v18  ;;  %1482 = vmatprep.subr.bf16.mxu1 %v1549_v18 }
  0x78   : > { %1131 = vperm.xlu0 %1542, %v1113_v26   ;;  %1136 = vperm.xlu1 %1543, %v1114_v27  }
  0x7c   : > { %1141 = vperm.xlu0 %1542, %v1115_v29   ;;  %1146 = vperm.xlu1 %1543, %v1116_v30  }
  0x7d   : > { %1456 = vmatpush3.bf16.xpose.msra.mxu0 %v1549_v18  ;;  %1490 = vmatpush3.bf16.xpose.msra.mxu1 %v1549_v18 }
  0x7e   : > { %1457 = vmatprep.subr.bf16.mxu0 %v1550_v23  ;;  %1483 = vmatprep.subr.bf16.mxu1 %v1550_v23 }
  0x80   : > { %1151 = vperm.xlu0 %1542, %v1117_v31   ;;  %1156 = vperm.xlu1 %1543, %v1118_v32  }
  0x84   : > { %1161 = vperm.xlu0 %1542, %v1119_v33   ;;  %1166 = vperm.xlu1 %1543, %v1120_v34  }
  0x85   : > { %1458 = vmatpush3.bf16.xpose.msra.mxu0 %v1550_v23  ;;  %1491 = vmatpush3.bf16.xpose.msra.mxu1 %v1550_v23 }
  0x86   : > { %1459 = vmatprep.subr.bf16.mxu0 %v1551_v28  ;;  %1484 = vmatprep.subr.bf16.mxu1 %v1551_v28 }
  0x88   : > { %1171 = vperm.xlu0 %1542, %v1121_v37   ;;  %1176 = vperm.xlu1 %1543, %v1122_v38  }
  0x8c   : > { %1181 = vperm.xlu0 %1542, %v1123_v41   ;;  %1186 = vperm.xlu1 %1543, %v1124_v42  }
  0x8d   : > { %1460 = vmatpush3.bf16.xpose.msra.mxu0 %v1551_v28  ;;  %1492 = vmatpush3.bf16.xpose.msra.mxu1 %v1551_v28 }
  0x90   : > { %1191 = vperm.xlu0 %1542, %v1125_v45   ;;  %1196 = vperm.xlu1 %1543, %v1126_v46  }
  0x94   : > { %1462 = vmatmul.mubr.bf16.vlgmr.msra.gmra.mxu0 %v1554_v35  ;;  %1470 = vmatmul.mubr.bf16.vlgmr.msra.gmra.mxu1 %v1555_v36 }
  0x95   : > { %1465 = vmatprep.mubr.bf16.mxu0 %v1556_v39  ;;  %1473 = vmatprep.mubr.bf16.mxu1 %v1557_v40 }
  0x96   : > { %1201 = vperm.xlu0 %1542, %v1127_v47   ;;  %1206 = vperm.xlu1 %1543, %v1128_v48  }
  0x9c   : > { %1466 = vmatmul.mubr.bf16.gmra.mxu0 %v1558_v43  ;;  %1474 = vmatmul.mubr.bf16.gmra.mxu1 %v1559_v44 }
  0xd3   : > { %v781_v49 = vpop.permute.xlu0 %780  ;;  %v791_v51 = vpop.permute.xlu1 %790 }
  0xd4   : > { %v866_v58 = vadd.f32 %v1881_v55, %v791_v51  ;;  %v864_v59 = vadd.f32 %v1881_v55, %v781_v49 }
  0xd7   : > { %v786_v50 = vpop.permute.xlu0 %785  ;;  %v796_v53 = vpop.permute.xlu1 %795 }
  0xd8   : > { %v867_v0 = vadd.f32 %v1881_v55, %v796_v53  ;;  %v865_v10 = vadd.f32 %v1881_v55, %v786_v50 }
  0xdb   : > { %v801_v52 = vpop.permute.xlu0 %800  ;;  %v1883_v56 = vpop.permute.xlu1 %805 }
  0xdc   : > { %v868_v28 = vadd.f32 %v1881_v55, %v801_v52  ;;  %v869_v53 = vadd.f32 %v1881_v55, %v1883_v56 }
  0xdf   : > { %v811_v54 = vpop.permute.xlu0 %810  ;;  %v816_v61 = vpop.permute.xlu1 %815 }
  0xe0   : > { %v870_v29 = vadd.f32 %v1881_v55, %v811_v54  ;;  %v871_v40 = vadd.f32 %v1881_v55, %v816_v61 }
  0xe3   : > { %v821_v57 = vpop.permute.xlu0 %820  ;;  %v826_v16 = vpop.permute.xlu1 %825 }
  0xe4   : > { %v872_v8 = vadd.f32 %v1881_v55, %v821_v57  ;;  %v873_v41 = vadd.f32 %v1881_v55, %v826_v16 }
  0xe7   : > { %v831_v62 = vpop.permute.xlu0 %830  ;;  %v836_v31 = vpop.permute.xlu1 %835 }
  0xe8   : > { %v874_v1 = vadd.f32 %v1881_v55, %v831_v62  ;;  %v875_v35 = vadd.f32 %v1881_v55, %v836_v31 }
  0xeb   : > { %v841_v42 = vpop.permute.xlu0 %840  ;;  %v846_v54 = vpop.permute.xlu1 %845 }
  0xef   : > { %v851_v57 = vpop.permute.xlu0 %850 }
  0xf0   : > { %v878_v62 = vadd.f32 %v1881_v55, %v851_v57 }
 0x154   : > { %v1463_v60 = vpop.f32.mrf.mxu0  ;;  %v1471_v2 = vpop.f32.mrf.mxu1 }
 0x155   : > { %v882_v63 = vsub.f32 %v866_v58, %v1463_v60  ;;  %v890_v12 = vsub.f32 %v874_v1, %v1471_v2  ;;  %v876_v2 = vadd.f32 %v1881_v55, %v841_v42 }
 0x156   : > { %v698_v3 = vpop.f32.mrf.mxu0  ;;  %v730_v13 = vpop.f32.mrf.mxu1 }
 0x157   : > { %v898_v4 = vmax.f32 %v882_v63, 0.0  ;;  %v880_v6 = vsub.f32 %v864_v59, %v698_v3  ;;  %v888_v22 = vsub.f32 %v872_v8, %v730_v13  ;;  %v906_v24 = vmax.f32 %v890_v12, 0.0  ;;  %v856_v13 = vpop.permute.xlu1 %855 }
 0x158   : > { %v1464_v7 = vpop.f32.mrf.mxu0  ;;  %v1472_v25 = vpop.f32.mrf.mxu1 }
 0x159   : > { %v896_v9 = vmax.f32 %v880_v6, 0.0  ;;  %v916_v11 = vmul.f32 %v1889_v5, %v898_v4  ;;  %v883_v14 = vsub.f32 %v867_v0, %v1464_v7  ;;  %v904_v32 = vmax.f32 %v888_v22, 0.0 }
 0x15a   : > { %v701_v15 = vpop.f32.mrf.mxu0  ;;  %v924_v36 = vmul.f32 %v1889_v5, %v906_v24  ;;  %v733_v37 = vpop.f32.mrf.mxu1  ;;  %v891_v49 = vsub.f32 %v875_v35, %v1472_v25 }
 0x15b   : > { %v914_v17 = vmul.f32 %v1889_v5, %v896_v9  ;;  %v899_v18 = vmax.f32 %v883_v14, 0.0  ;;  %v881_v19 = vsub.f32 %v865_v10, %v701_v15  ;;  %v934_v23 = vmul.f32 1.442695, %v916_v11 }
 0x15c   : > { %v1467_v20 = vpop.f32.mrf.mxu0  ;;  %v922_v44 = vmul.f32 %v1889_v5, %v904_v32  ;;  %v950_v48 = vmul.f32 1.442695, %v924_v36  ;;  %v1475_v51 = vpop.f32.mrf.mxu1  ;;  %v889_v52 = vsub.f32 %v873_v41, %v733_v37  ;;  %v907_v63 = vmax.f32 %v891_v49, 0.0 }
 0x15d   : > { %v930_v21 = vmul.f32 1.442695, %v914_v17  ;;  %v897_v26 = vmax.f32 %v881_v19, 0.0  ;;  %v917_v30 = vmul.f32 %v1889_v5, %v899_v18  ;;  %v886_v38 = vsub.f32 %v870_v29, %v1467_v20 }
 0x15e   : > { %v714_v27 = vpop.f32.mrf.mxu0  ;;  %v946_v58 = vmul.f32 1.442695, %v922_v44  ;;  %v746_v1 = vpop.f32.mrf.mxu1  ;;  %v905_v56 = vmax.f32 %v889_v52, 0.0  ;;  %v894_v4 = vsub.f32 %v878_v62, %v1475_v51  ;;  %v925_v10 = vmul.f32 %v1889_v5, %v907_v63 }
 0x15f   : > { %1560 = vpow2.f32 %v930_v21  ;;  %v915_v33 = vmul.f32 %v1889_v5, %v897_v26  ;;  %v884_v34 = vsub.f32 %v868_v28, %v714_v27  ;;  %v936_v43 = vmul.f32 1.442695, %v917_v30 }
 0x160   : > { %1562 = vpow2.f32 %v934_v23  ;;  %v1468_v39 = vpop.f32.mrf.mxu0  ;;  %v902_v50 = vmax.f32 %v886_v38, 0.0  ;;  %v892_v8 = vsub.f32 %v876_v2, %v746_v1  ;;  %v923_v15 = vmul.f32 %v1889_v5, %v905_v56  ;;  %v1476_v16 = vpop.f32.mrf.mxu1 }
 0x161   : > { %v932_v45 = vmul.f32 1.442695, %v915_v33  ;;  %v900_v46 = vmax.f32 %v884_v34, 0.0  ;;  %v887_v47 = vsub.f32 %v871_v40, %v1468_v39  ;;  %1564 = vpow2.f32 %v936_v43 }
 0x162   : > { %v717_v61 = vpop.f32.mrf.mxu0  ;;  %v920_v0 = vmul.f32 %v1889_v5, %v902_v50  ;;  %v879_v17 = vadd.f32 %v1881_v55, %v856_v13  ;;  %v910_v19 = vmax.f32 %v894_v4, 0.0  ;;  %v908_v20 = vmax.f32 %v892_v8, 0.0  ;;  %v1132_v8 = vpop.permute.xlu0 %1131 }
 0x163   : > { %1566 = vpow2.f32 %v932_v45  ;;  %v918_v59 = vmul.f32 %v1889_v5, %v900_v46  ;;  %v903_v60 = vmax.f32 %v887_v47, 0.0  ;;  %v885_v6 = vsub.f32 %v869_v53, %v717_v61  ;;  %v749_v45 = vpop.f32.mrf.mxu1 }
 0x164   : > { %1568 = vpow2.f32 %v950_v48  ;;  %v942_v11 = vmul.f32 1.442695, %v920_v0  ;;  %v952_v23 = vmul.f32 1.442695, %v925_v10  ;;  %v895_v24 = vsub.f32 %v879_v17, %v1476_v16  ;;  %v1137_v17 = vpop.permute.xlu1 %1136 }
 0x165   : > { %1570 = vpow2.f32 %v946_v58  ;;  %v938_v7 = vmul.f32 1.442695, %v918_v59  ;;  %v921_v9 = vmul.f32 %v1889_v5, %v903_v60  ;;  %v901_v18 = vmax.f32 %v885_v6, 0.0 }
 0x166   : > { %v948_v27 = vmul.f32 1.442695, %v923_v15  ;;  %v928_v30 = vmul.f32 %v1889_v5, %v910_v19  ;;  %v926_v31 = vmul.f32 %v1889_v5, %v908_v20  ;;  %v911_v35 = vmax.f32 %v895_v24, 0.0 }
 0x167   : > { %1572 = vpow2.f32 %v938_v7  ;;  %v944_v21 = vmul.f32 1.442695, %v921_v9  ;;  %v919_v28 = vmul.f32 %v1889_v5, %v901_v18  ;;  %v877_v41 = vadd.f32 %v1881_v55, %v846_v54  ;;  %v1932_v18 = vld [vmem:[%s528_s15] ss:$0 sm:$0xff] }
 0x168   : > { %1574 = vpow2.f32 %v942_v11  ;;  %v958_v43 = vmul.f32 1.442695, %v928_v30  ;;  %v954_v44 = vmul.f32 1.442695, %v926_v31  ;;  %v929_v50 = vmul.f32 %v1889_v5, %v911_v35 }
 0x169   : > { %1576 = vpow2.f32 %v944_v21  ;;  %v940_v40 = vmul.f32 1.442695, %v919_v28  ;;  %v893_v54 = vsub.f32 %v877_v41, %v749_v45 }
 0x16a   : > { %1578 = vpow2.f32 %v952_v23  ;;  %v960_v2 = vmul.f32 1.442695, %v929_v50 }
 0x16b   : > { %1580 = vpow2.f32 %v948_v27  ;;  %v909_v11 = vmax.f32 %v893_v54, 0.0 }
 0x16c   : > { %v1561_v3 = vpop.eup %1560  ;;  %1582 = vpow2.f32 %v940_v40 }
 0x16d   : > { %v1563_v12 = vpop.eup %1562  ;;  %v962_v14 = vmul.f32 %v1561_v3, %v1561_v3  ;;  %1584 = vpow2.f32 %v954_v44 }
 0x16e   : > { %v964_v22 = vmul.f32 %v1563_v12, %v1563_v12  ;;  %v1565_v29 = vpop.eup %1564  ;;  %1586 = vpow2.f32 %v958_v43  ;;  %v1147_v43 = vpop.permute.xlu1 %1146 }
 0x16f   : > { %v978_v25 = vadd.f32 %v1561_v3, %v962_v14  ;;  %v994_v26 = vmul.f32 %v962_v14, %v962_v14  ;;  %v965_v39 = vmul.f32 %v1565_v29, %v1565_v29  ;;  %1588 = vpow2.f32 %v960_v2 }
 0x170   : > { %v1567_v32 = vpop.eup %1566  ;;  %v980_v33 = vadd.f32 %v1563_v12, %v964_v22  ;;  %v996_v34 = vmul.f32 %v964_v22, %v964_v22 }
 0x171   : > { %v1569_v36 = vpop.eup %1568  ;;  %v1010_v37 = vadd.f32 %v994_v26, %v978_v25  ;;  %v1026_v38 = vmul.f32 %v994_v26, %v994_v26  ;;  %v963_v42 = vmul.f32 %v1567_v32, %v1567_v32  ;;  %v981_v58 = vadd.f32 %v1565_v29, %v965_v39 }
 0x172   : > { %v1571_v46 = vpop.eup %1570  ;;  %v1012_v47 = vadd.f32 %v996_v34, %v980_v33  ;;  %v1028_v48 = vmul.f32 %v996_v34, %v996_v34  ;;  %v972_v49 = vmul.f32 %v1569_v36, %v1569_v36  ;;  %v997_v55 = vmul.f32 %v965_v39, %v965_v39  ;;  %v1142_v34 = vpop.permute.xlu0 %1141 }
 0x173   : > { %v1042_v51 = vadd.f32 %v1026_v38, %v1010_v37  ;;  %v1058_v52 = vmul.f32 %v1026_v38, %v1026_v38  ;;  %v979_v53 = vadd.f32 %v1567_v32, %v963_v42  ;;  %v995_v57 = vmul.f32 %v963_v42, %v963_v42 }
 0x174   : > { %v970_v59 = vmul.f32 %v1571_v46, %v1571_v46  ;;  %v1573_v62 = vpop.eup %1572  ;;  %v1044_v63 = vadd.f32 %v1028_v48, %v1012_v47  ;;  %v988_v0 = vadd.f32 %v1569_v36, %v972_v49  ;;  %v1004_v1 = vmul.f32 %v972_v49, %v972_v49 }
 0x175   : > { %v1011_v60 = vadd.f32 %v995_v57, %v979_v53  ;;  %v1027_v61 = vmul.f32 %v995_v57, %v995_v57  ;;  %v1575_v56 = vpop.eup %1574  ;;  %v1060_v3 = vmul.f32 %v1028_v48, %v1028_v48  ;;  %v1074_v4 = vadd.f32 %v1058_v52, %v1042_v51 }
 0x176   : > { %v1013_v9 = vadd.f32 %v997_v55, %v981_v58  ;;  %v1029_v10 = vmul.f32 %v997_v55, %v997_v55  ;;  %v986_v12 = vadd.f32 %v1571_v46, %v970_v59  ;;  %v1002_v13 = vmul.f32 %v970_v59, %v970_v59  ;;  %v1577_v16 = vpop.eup %1576 }
 0x177   : > { %v1043_v6 = vadd.f32 %v1027_v61, %v1011_v60  ;;  %v1059_v7 = vmul.f32 %v1027_v61, %v1027_v61  ;;  %v966_v15 = vmul.f32 %v1573_v62, %v1573_v62  ;;  %v1020_v19 = vadd.f32 %v1004_v1, %v988_v0  ;;  %v1579_v21 = vpop.eup %1578 }
 0x178   : > { %v968_v20 = vmul.f32 %v1575_v56, %v1575_v56  ;;  %v1076_v22 = vadd.f32 %v1060_v3, %v1044_v63  ;;  %v1934_v23 = vmul.f32 %v1004_v1, %v1004_v1  ;;  %v1097_v24 = vmul.f32 %v1932_v18, %v1074_v4  ;;  %v1581_v26 = vpop.eup %1580 }
 0x179   : > { %v1075_v14 = vadd.f32 %v1059_v7, %v1043_v6  ;;  %v1045_v27 = vadd.f32 %v1029_v10, %v1013_v9  ;;  %v1061_v28 = vmul.f32 %v1029_v10, %v1029_v10  ;;  %v982_v29 = vadd.f32 %v1573_v62, %v966_v15  ;;  %v1583_v48 = vpop.eup %1582  ;;  %v1152_v62 = vpop.permute.xlu0 %1151 }
 0x17a   : > { %v998_v30 = vmul.f32 %v966_v15, %v966_v15  ;;  %v1018_v31 = vadd.f32 %v1002_v13, %v986_v12  ;;  %v969_v32 = vmul.f32 %v1577_v16, %v1577_v16  ;;  %v927_v33 = vmul.f32 %v1889_v5, %v909_v11  ;;  %v1585_v52 = vpop.eup %1584 }
 0x17b   : > { %v1098_v25 = vmul.f32 %v1932_v18, %v1075_v14  ;;  %v1034_v35 = vmul.f32 %v1002_v13, %v1002_v13  ;;  %v984_v36 = vadd.f32 %v1575_v56, %v968_v20  ;;  %v1000_v37 = vmul.f32 %v968_v20, %v968_v20  ;;  %v1587_v56 = vpop.eup %1586 }
 0x17c   : > { %v1014_v38 = vadd.f32 %v998_v30, %v982_v29  ;;  %v973_v39 = vmul.f32 %v1579_v21, %v1579_v21  ;;  %v971_v41 = vmul.f32 %v1581_v26, %v1581_v26  ;;  %v1030_v42 = vmul.f32 %v998_v30, %v998_v30  ;;  %v1589_v13 = vpop.eup %1588 }
 0x17d   : > { %v1210_v40 = vmul.f32 %v1137_v17, %v1098_v25  ;;  %v1099_v44 = vmul.f32 %v1932_v18, %v1076_v22  ;;  %v1941_v45 = vadd.f32 %v1934_v23, %v1020_v19  ;;  %v1209_v46 = vmul.f32 %v1132_v8, %v1097_v24  ;;  %v1157_v8 = vpop.permute.xlu1 %1156 }
 0x17e   : > { %v1077_v47 = vadd.f32 %v1061_v28, %v1045_v27  ;;  %v1046_v49 = vadd.f32 %v1030_v42, %v1014_v38  ;;  %v1062_v5 = vmul.f32 %v1030_v42, %v1030_v42  ;;  %v985_v50 = vadd.f32 %v1577_v16, %v969_v32  ;;  %v1162_v27 = vpop.permute.xlu0 %1161 }
 0x17f   : > { %v1001_v51 = vmul.f32 %v969_v32, %v969_v32  ;;  %v1050_v53 = vadd.f32 %v1034_v35, %v1018_v31  ;;  %v1066_v57 = vmul.f32 %v1034_v35, %v1034_v35  ;;  %v1016_v58 = vadd.f32 %v1000_v37, %v984_v36 }
 0x180   : > { %v1032_v55 = vmul.f32 %v1000_v37, %v1000_v37  ;;  %v989_v54 = vadd.f32 %v1579_v21, %v973_v39  ;;  %v1005_v59 = vmul.f32 %v973_v39, %v973_v39  ;;  %v1225_v60 = vadd.f32 %v1210_v40, %v1209_v46 }
 0x181   : > { %v987_v61 = vadd.f32 %v1581_v26, %v971_v41  ;;  %v1100_v63 = vmul.f32 %v1932_v18, %v1077_v47  ;;  %v1003_v0 = vmul.f32 %v971_v41, %v971_v41  ;;  %v1078_v1 = vadd.f32 %v1062_v5, %v1046_v49  ;;  %v1167_v36 = vpop.permute.xlu1 %1166 }
 0x182   : > { %v967_v2 = vmul.f32 %v1583_v48, %v1583_v48  ;;  %v1211_v3 = vmul.f32 %v1142_v34, %v1099_v44  ;;  %v1017_v4 = vadd.f32 %v1001_v51, %v985_v50  ;;  %v1033_v6 = vmul.f32 %v1001_v51, %v1001_v51 }
 0x183   : > { %v956_v7 = vmul.f32 1.442695, %v927_v33  ;;  %v1048_v9 = vadd.f32 %v1032_v55, %v1016_v58  ;;  %v1064_v10 = vmul.f32 %v1032_v55, %v1032_v55  ;;  %v974_v11 = vmul.f32 %v1585_v52, %v1585_v52  ;;  %v1172_v58 = vpop.permute.xlu0 %1171 }
 0x184   : > { %v983_v12 = vadd.f32 %v1583_v48, %v967_v2  ;;  %v1021_v14 = vadd.f32 %v1005_v59, %v989_v54  ;;  %v1226_v15 = vadd.f32 %v1225_v60, %v1211_v3  ;;  %v999_v16 = vmul.f32 %v967_v2, %v967_v2 }
 0x185   : > { %1590 = vpow2.f32 %v956_v7  ;;  %v1212_v17 = vmul.f32 %v1147_v43, %v1100_v63  ;;  %v1019_v19 = vadd.f32 %v1003_v0, %v987_v61  ;;  %v1035_v20 = vmul.f32 %v1003_v0, %v1003_v0  ;;  %v1177_v60 = vpop.permute.xlu1 %1176 }
 0x186   : > { %v1101_v21 = vmul.f32 %v1932_v18, %v1078_v1  ;;  %v1049_v22 = vadd.f32 %v1033_v6, %v1017_v4  ;;  %v1065_v24 = vmul.f32 %v1033_v6, %v1033_v6  ;;  %v1015_v25 = vadd.f32 %v999_v16, %v983_v12 }
 0x187   : > { %v1031_v26 = vmul.f32 %v999_v16, %v999_v16  ;;  %v1037_v28 = vmul.f32 %v1005_v59, %v1005_v59  ;;  %v1080_v29 = vadd.f32 %v1064_v10, %v1048_v9  ;;  %v976_v30 = vmul.f32 %v1587_v56, %v1587_v56 }
 0x188   : > { %v990_v31 = vadd.f32 %v1585_v52, %v974_v11  ;;  %v1227_v32 = vadd.f32 %v1226_v15, %v1212_v17  ;;  %v1006_v33 = vmul.f32 %v974_v11, %v974_v11  ;;  %v1068_v37 = vmul.f32 %v1934_v23, %v1934_v23 }
 0x189   : > { %v1047_v34 = vadd.f32 %v1031_v26, %v1015_v25  ;;  %v1063_v35 = vmul.f32 %v1031_v26, %v1031_v26  ;;  %v1051_v38 = vadd.f32 %v1035_v20, %v1019_v19  ;;  %v1067_v39 = vmul.f32 %v1035_v20, %v1035_v20 }
 0x18a   : > { %v977_v40 = vmul.f32 %v1589_v13, %v1589_v13  ;;  %v1082_v41 = vadd.f32 %v1066_v57, %v1050_v53  ;;  %v1213_v42 = vmul.f32 %v1152_v62, %v1101_v21  ;;  %v1081_v43 = vadd.f32 %v1065_v24, %v1049_v22  ;;  %v1187_v22 = vpop.permute.xlu1 %1186 }
 0x18b   : > { %v1079_v44 = vadd.f32 %v1063_v35, %v1047_v34  ;;  %v1053_v46 = vadd.f32 %v1037_v28, %v1021_v14  ;;  %v1103_v47 = vmul.f32 %v1932_v18, %v1080_v29  ;;  %v992_v48 = vadd.f32 %v1587_v56, %v976_v30 }
 0x18c   : > { %v1008_v49 = vmul.f32 %v976_v30, %v976_v30  ;;  %v1228_v5 = vadd.f32 %v1227_v32, %v1213_v42  ;;  %v1022_v50 = vadd.f32 %v1006_v33, %v990_v31  ;;  %v1038_v51 = vmul.f32 %v1006_v33, %v1006_v33 }
 0x18d   : > { %v1102_v52 = vmul.f32 %v1932_v18, %v1079_v44  ;;  %v1069_v55 = vmul.f32 %v1037_v28, %v1037_v28  ;;  %v1083_v23 = vadd.f32 %v1067_v39, %v1051_v38  ;;  %v993_v54 = vadd.f32 %v1589_v13, %v977_v40  ;;  %v1182_v13 = vpop.permute.xlu0 %1181 }
 0x18e   : > { %v1009_v59 = vmul.f32 %v977_v40, %v977_v40  ;;  %v1104_v53 = vmul.f32 %v1932_v18, %v1081_v43  ;;  %v1084_v61 = vadd.f32 %v1068_v37, %v1941_v45  ;;  %v1105_v62 = vmul.f32 %v1932_v18, %v1082_v41  ;;  %v1197_v42 = vpop.permute.xlu1 %1196 }
 0x18f   : > { %v1214_v57 = vmul.f32 %v1157_v8, %v1102_v52  ;;  %v1024_v63 = vadd.f32 %v1008_v49, %v992_v48  ;;  %v1040_v0 = vmul.f32 %v1008_v49, %v1008_v49  ;;  %v1215_v1 = vmul.f32 %v1162_v27, %v1103_v47 }
 0x190   : > { %v1054_v2 = vadd.f32 %v1038_v51, %v1022_v50  ;;  %v1070_v56 = vmul.f32 %v1038_v51, %v1038_v51  ;;  %v1085_v6 = vadd.f32 %v1069_v55, %v1053_v46  ;;  %v1106_v7 = vmul.f32 %v1932_v18, %v1083_v23 }
 0x191   : > { %v1229_v3 = vadd.f32 %v1228_v5, %v1214_v57  ;;  %v1025_v9 = vadd.f32 %v1009_v59, %v993_v54  ;;  %v1041_v10 = vmul.f32 %v1009_v59, %v1009_v59  ;;  %v1216_v11 = vmul.f32 %v1167_v36, %v1104_v53  ;;  %v1192_v37 = vpop.permute.xlu0 %1191 }
 0x192   : > { %v1591_v4 = vpop.eup %1590  ;;  %v1107_v45 = vmul.f32 %v1932_v18, %v1084_v61  ;;  %v1217_v14 = vmul.f32 %v1172_v58, %v1105_v62  ;;  %v1056_v15 = vadd.f32 %v1040_v0, %v1024_v63  ;;  %v1072_v16 = vmul.f32 %v1040_v0, %v1040_v0  ;;  %v1207_v58 = vpop.permute.xlu1 %1206 }
 0x193   : > { %v1230_v12 = vadd.f32 %v1229_v3, %v1215_v1  ;;  %v975_v8 = vmul.f32 %v1591_v4, %v1591_v4  ;;  %v1086_v17 = vadd.f32 %v1070_v56, %v1054_v2  ;;  %v1108_v24 = vmul.f32 %v1932_v18, %v1085_v6 }
 0x194   : > { %v1218_v25 = vmul.f32 %v1177_v60, %v1106_v7  ;;  %v1057_v26 = vadd.f32 %v1041_v10, %v1025_v9  ;;  %v1073_v27 = vmul.f32 %v1041_v10, %v1041_v10  ;;  %v1219_v31 = vmul.f32 %v1182_v13, %v1107_v45 }
 0x195   : > { %v1231_v19 = vadd.f32 %v1230_v12, %v1216_v11  ;;  %v991_v20 = vadd.f32 %v1591_v4, %v975_v8  ;;  %v1007_v21 = vmul.f32 %v975_v8, %v975_v8  ;;  %v1088_v32 = vadd.f32 %v1072_v16, %v1056_v15  ;;  %v1202_v50 = vpop.permute.xlu0 %1201 }
 0x196   : > { %v1109_v33 = vmul.f32 %v1932_v18, %v1086_v17  ;;  %v1220_v38 = vmul.f32 %v1187_v22, %v1108_v24  ;;  %v1089_v39 = vadd.f32 %v1073_v27, %v1057_v26  ;;  %v1248_v54 = vstv %s1246_s16 }
 0x197   : > { %v1232_v28 = vadd.f32 %v1231_v19, %v1217_v14  ;;  %v1023_v29 = vadd.f32 %v1007_v21, %v991_v20  ;;  %v1039_v30 = vmul.f32 %v1007_v21, %v1007_v21  ;;  %v1111_v43 = vmul.f32 %v1932_v18, %v1088_v32 }
 0x198   : > { %v1221_v44 = vmul.f32 %v1192_v37, %v1109_v33  ;;  %v1112_v48 = vmul.f32 %v1932_v18, %v1089_v39 }
 0x199   : > { %v1055_v34 = vadd.f32 %v1039_v30, %v1023_v29  ;;  %v1071_v35 = vmul.f32 %v1039_v30, %v1039_v30  ;;  %v1233_v36 = vadd.f32 %v1232_v28, %v1218_v25  ;;  %v1223_v51 = vmul.f32 %v1202_v50, %v1111_v43 }
 0x19a   : > { %v1224_v55 = vmul.f32 %v1207_v58, %v1112_v48 }
 0x19b   : > { %v1087_v40 = vadd.f32 %v1071_v35, %v1055_v34  ;;  %v1234_v41 = vadd.f32 %v1233_v36, %v1219_v31 }
 0x19d   : > { %v1110_v46 = vmul.f32 %v1932_v18, %v1087_v40  ;;  %v1235_v47 = vadd.f32 %v1234_v41, %v1220_v38 }
 0x19f   : > { %v1222_v49 = vmul.f32 %v1197_v42, %v1110_v46  ;;  %v1236_v5 = vadd.f32 %v1235_v47, %v1221_v44 }
 0x1a1   : > { %v1237_v52 = vadd.f32 %v1236_v5, %v1222_v49 }
 0x1a3   : > { %v1238_v23 = vadd.f32 %v1237_v52, %v1223_v51 }
 0x1a5   : > { %v1239_v59 = vadd.f32 %v1238_v23, %v1224_v55 }
 0x1a7   : > { %v1249_v53 = vmul.f32 %v1248_v54, %v1239_v59 }
 0x1a9   : > { %1251 = vst [vmem:[%s534_s20] sm:$0xff] %v1249_v53 }
 0x1aa PF: > { %s32_s23 = sadd.s32 1, %s1678_s23   ;;  %s1993_s1 = smov %s1674_s22 }
 0x1ab   : > { %p29_p11 = scmp.ge.s32.totalorder %s32_s23, 4   ;;  %s1994_s22 = smov %s1996_s25 }
 0x1ad   :  { %31 = sbr.rel (!%p29_p11) target bundleno = 28 (0x1c), region = 110 }
 0x1b2   :  { %1271 = vsyncpa [#allocation6], 1 }
 0x1b3   :  { %1273 = vsyncpa [#allocation6 + $0x1], 1 }
 0x1b4   :  { %1274 = vsyncpa [#allocation8], 1 }

</bundles_post_ra>
